<compile_context>
chip_gen: v6e
topology: v6e:2x2x1
jax: 0.10.0
libtpu: 0.0.40
codegen_flags: <defaults>
</compile_context>

<pallas_src>
import math
import jax
import jax.numpy as jnp
from jax.experimental import pallas as pl
from jax.experimental.pallas import tpu as pltpu

_INV_SQRT2 = 1.0 / math.sqrt(2.0)
N_PAD = 128  # lane-dense width of the packed output slab / padded class dim


def dense_head_kernel(x_ref, w1_ref, b1_ref, w2_ref, b2_ref, lab_ref, out_ref):
    # ---- Linear(H, H): bf16 operands on the MXU, f32 accumulation ----
    h = jnp.dot(x_ref[...], w1_ref[...], preferred_element_type=jnp.float32)
    h = h + b1_ref[...]
    # exact-erf GELU (nn.GELU default), kept in f32 to preserve module numerics
    h = 0.5 * h * (1.0 + jax.lax.erf(h * _INV_SQRT2))

    # ---- Linear(H, 2), zero-padded to 128 output lanes (cols >= 2 are zero) ----
    z = jnp.dot(h, w2_ref[...], preferred_element_type=jnp.float32) + b2_ref[...]
    z0 = z[:, 0:1]                                             # (TB, 1)
    z1 = z[:, 1:2]                                             # (TB, 1)

    # ---- Softmax(dim=-1) over the 2 real classes ----
    zm = jnp.maximum(z0, z1)
    e0 = jnp.exp(z0 - zm)
    e1 = jnp.exp(z1 - zm)
    inv = 1.0 / (e0 + e1)
    p0 = e0 * inv
    p1 = e1 * inv

    # pred = argmax(probs) == argmax(z) (softmax monotone; ties -> index 0, as torch.max)
    pred = (z1 > z0).astype(jnp.float32)

    # CrossEntropyLoss applied to the softmax outputs (log_softmax over probs + NLL)
    pm = jnp.maximum(p0, p1)
    lse = jnp.log(jnp.exp(p0 - pm) + jnp.exp(p1 - pm)) + pm
    lab = lab_ref[...].astype(jnp.float32)                     # (TB, 1) in {0, 1}
    ce = -(lab * (p1 - lse) + (1.0 - lab) * (p0 - lse))        # (TB, 1)

    # ---- pack probs / pred / per-row CE into one lane-dense (TB, 128) slab ----
    col = jax.lax.broadcasted_iota(jnp.int32, out_ref.shape, 1)
    slab = jnp.where(col == 0, p0, 0.0)
    slab = jnp.where(col == 1, p1, slab)
    slab = jnp.where(col == 2, pred, slab)
    slab = jnp.where(col == 3, ce, slab)
    out_ref[...] = slab


def dense_head(x, w1, b1, w2, b2, labels, *, tb=256):
    """x: (B, H) pooler_output; w1: (H, H); b1: (H,); w2: (H, 2); b2: (2,); labels: (B,) int."""
    B, H = x.shape
    # 256-row tiles fill the v6e/v7x MXU (128 already saturates v5e); clamp for small B.
    TB = min(tb, ((B + 7) // 8) * 8)
    B_pad = ((B + TB - 1) // TB) * TB
    grid = (B_pad // TB,)

    # Dominant operands in bf16 (native MXU path, half the HBM bytes); everything tiny in f32.
    x_p = jnp.zeros((B_pad, H), jnp.bfloat16).at[:B].set(x.astype(jnp.bfloat16))
    w1_b = w1.astype(jnp.bfloat16)
    b1_r = b1.reshape(1, H).astype(jnp.float32)
    w2_p = jnp.zeros((H, N_PAD), jnp.float32).at[:, :2].set(w2.astype(jnp.float32))
    b2_p = jnp.zeros((1, N_PAD), jnp.float32).at[:, :2].set(
        b2.reshape(1, 2).astype(jnp.float32))
    lab_p = jnp.zeros((B_pad, 1), jnp.int32).at[:B, 0].set(labels.astype(jnp.int32))

    # VMEM budget: resident weights + double-buffered x / label / output tiles (+headroom).
    vmem_bytes = (2 * TB * H * 2 + H * H * 2 + H * 4 + H * N_PAD * 4
                  + N_PAD * 4 + 2 * TB * 4 + 2 * TB * N_PAD * 4)
    vmem_limit = int(min(100 * 1024 * 1024, max(2 * vmem_bytes, 4 * 1024 * 1024)))

    cost = pl.CostEstimate(
        flops=2 * B_pad * H * H + 2 * B_pad * H * N_PAD,
        transcendentals=4 * B_pad * H,
        bytes_accessed=B_pad * H * 2 + H * H * 2 + H * N_PAD * 4 + B_pad * N_PAD * 4,
    )

    slab = pl.pallas_call(
        dense_head_kernel,
        out_shape=jax.ShapeDtypeStruct((B_pad, N_PAD), jnp.float32),
        grid_spec=pltpu.PrefetchScalarGridSpec(
            num_scalar_prefetch=0,
            grid=grid,
            in_specs=[
                pl.BlockSpec((TB, H), lambda i: (i, 0)),        # x: streamed row tiles
                pl.BlockSpec((H, H), lambda i: (0, 0)),         # W1: VMEM-resident
                pl.BlockSpec((1, H), lambda i: (0, 0)),         # b1: resident
                pl.BlockSpec((H, N_PAD), lambda i: (0, 0)),     # W2 (padded): resident
                pl.BlockSpec((1, N_PAD), lambda i: (0, 0)),     # b2 (padded): resident
                pl.BlockSpec((TB, 1), lambda i: (i, 0)),        # labels: streamed
            ],
            out_specs=pl.BlockSpec((TB, N_PAD), lambda i: (i, 0)),
        ),
        compiler_params=pltpu.CompilerParams(
            dimension_semantics=("parallel",),                  # shard batch across v7x TCs
            vmem_limit_bytes=vmem_limit,
        ),
        cost_estimate=cost,
    )(x_p, w1_b, b1_r, w2_p, b2_p, lab_p)

    probs = slab[:B, :2]                       # softmax "logits" of the module
    pred = slab[:B, 2].astype(jnp.int32)
    loss = jnp.mean(slab[:B, 3])               # mean over the TRUE batch (no padding bias)
    return loss, {"ce_loss": loss, "pred": pred, "logits": probs}


if __name__ == "__main__":
    B, H = 8, 128  # small synthetic shapes (RoBERTa hidden_size stand-in)
    key = jax.random.PRNGKey(0)
    kx, kw1, kb1, kw2, kb2, kl = jax.random.split(key, 6)

    # Deterministic synthetic parameters (PyTorch Linear-style uniform init).
    bound1 = 1.0 / math.sqrt(H)
    w1 = jax.random.uniform(kw1, (H, H), jnp.float32, -bound1, bound1)   # (in, out)
    b1 = jax.random.uniform(kb1, (H,), jnp.float32, -bound1, bound1)
    w2 = jax.random.uniform(kw2, (H, 2), jnp.float32, -bound1, bound1)   # (in, out)
    b2 = jax.random.uniform(kb2, (2,), jnp.float32, -bound1, bound1)

    # Synthetic pooler_output and class labels.
    x = jax.random.normal(kx, (B, H), jnp.float32)
    class_label = jax.random.randint(kl, (B,), 0, 2, jnp.int32)

    loss, aux = dense_head(x, w1, b1, w2, b2, class_label)
    jax.block_until_ready((loss, aux["pred"], aux["logits"]))

    # Loose-tolerance pure-JAX reference (delta comes from the bf16 first matmul).
    h_ref = x @ w1 + b1
    h_ref = 0.5 * h_ref * (1.0 + jax.lax.erf(h_ref / math.sqrt(2.0)))
    z_ref = h_ref @ w2 + b2
    probs_ref = jax.nn.softmax(z_ref, axis=-1)
    logsm_ref = jax.nn.log_softmax(probs_ref, axis=-1)
    loss_ref = -jnp.mean(logsm_ref[jnp.arange(B), class_label])
    assert jnp.allclose(aux["logits"], probs_ref, atol=5e-2), "probs mismatch"
    assert jnp.allclose(loss, loss_ref, atol=5e-2), "loss mismatch"

    print("KERNEL_OK")
</pallas_src>

<mosaic_0001>
module attributes {stable_mosaic.version = 11 : i64} {
  func.func @dense_head_kernel(%arg0: i32, %arg1: memref<8x128xbf16, #tpu.memory_space<vmem>>, %arg2: memref<128x128xbf16, #tpu.memory_space<vmem>>, %arg3: memref<1x128xf32, #tpu.memory_space<vmem>>, %arg4: memref<128x128xf32, #tpu.memory_space<vmem>>, %arg5: memref<1x128xf32, #tpu.memory_space<vmem>>, %arg6: memref<8x1xi32, #tpu.memory_space<vmem>>, %arg7: memref<8x128xf32, #tpu.memory_space<vmem>>) attributes {dimension_semantics = [#tpu.dimension_semantics<parallel>], iteration_bounds = array<i64: 1>, scalar_prefetch = 0 : i64, scratch_operands = 0 : i64, tpu.core_type = #tpu.core_type<tc>, window_params = [{transform_indices = @transform_0, window_bounds = array<i64: 8, 128>}, {pipeline_mode = #tpu.pipeline_mode<synchronous>, transform_indices = @transform_1, window_bounds = array<i64: 128, 128>}, {pipeline_mode = #tpu.pipeline_mode<synchronous>, transform_indices = @transform_2, window_bounds = array<i64: 1, 128>}, {pipeline_mode = #tpu.pipeline_mode<synchronous>, transform_indices = @transform_3, window_bounds = array<i64: 128, 128>}, {pipeline_mode = #tpu.pipeline_mode<synchronous>, transform_indices = @transform_4, window_bounds = array<i64: 1, 128>}, {transform_indices = @transform_5, window_bounds = array<i64: 8, 1>}, {transform_indices = @transform_6, window_bounds = array<i64: 8, 128>}]} {
    %c0 = arith.constant 0 : index
    %c0_0 = arith.constant 0 : index
    %0 = vector.load %arg1[%c0, %c0_0] : memref<8x128xbf16, #tpu.memory_space<vmem>>, vector<8x128xbf16>
    %c0_1 = arith.constant 0 : index
    %c0_2 = arith.constant 0 : index
    %1 = vector.load %arg2[%c0_1, %c0_2] : memref<128x128xbf16, #tpu.memory_space<vmem>>, vector<128x128xbf16>
    %cst = arith.constant dense<0.000000e+00> : vector<8x128xf32>
    %2 = tpu.matmul %0, %1, %cst {dimension_numbers = #tpu.dot_dimension_numbers<[1], [0], [0], [1], [0, 0, 1, 1], [], []>} : vector<8x128xbf16>, vector<128x128xbf16>, vector<8x128xf32> -> vector<8x128xf32>
    %c0_3 = arith.constant 0 : index
    %c0_4 = arith.constant 0 : index
    %3 = vector.load %arg3[%c0_3, %c0_4] : memref<1x128xf32, #tpu.memory_space<vmem>>, vector<1x128xf32>
    %4 = vector.broadcast %3 : vector<1x128xf32> to vector<8x128xf32>
    %5 = arith.addf %2, %4 : vector<8x128xf32>
    %cst_5 = arith.constant 5.000000e-01 : f32
    %6 = vector.broadcast %cst_5 : f32 to vector<8x128xf32>
    %7 = arith.mulf %6, %5 : vector<8x128xf32>
    %cst_6 = arith.constant 0.707106769 : f32
    %8 = vector.broadcast %cst_6 : f32 to vector<8x128xf32>
    %9 = arith.mulf %5, %8 : vector<8x128xf32>
    %10 = math.erf %9 : vector<8x128xf32>
    %cst_7 = arith.constant 1.000000e+00 : f32
    %11 = vector.broadcast %cst_7 : f32 to vector<8x128xf32>
    %12 = arith.addf %11, %10 : vector<8x128xf32>
    %13 = arith.mulf %7, %12 : vector<8x128xf32>
    %c0_8 = arith.constant 0 : index
    %c0_9 = arith.constant 0 : index
    %14 = vector.load %arg4[%c0_8, %c0_9] : memref<128x128xf32, #tpu.memory_space<vmem>>, vector<128x128xf32>
    %cst_10 = arith.constant dense<0.000000e+00> : vector<8x128xf32>
    %15 = tpu.matmul %13, %14, %cst_10 {dimension_numbers = #tpu.dot_dimension_numbers<[1], [0], [0], [1], [0, 0, 1, 1], [], []>} : vector<8x128xf32>, vector<128x128xf32>, vector<8x128xf32> -> vector<8x128xf32>
    %c0_11 = arith.constant 0 : index
    %c0_12 = arith.constant 0 : index
    %16 = vector.load %arg5[%c0_11, %c0_12] : memref<1x128xf32, #tpu.memory_space<vmem>>, vector<1x128xf32>
    %17 = vector.broadcast %16 : vector<1x128xf32> to vector<8x128xf32>
    %18 = arith.addf %15, %17 : vector<8x128xf32>
    %19 = vector.extract_strided_slice %18 {offsets = [0, 0], sizes = [8, 1], strides = [1, 1]} : vector<8x128xf32> to vector<8x1xf32>
    %20 = vector.extract_strided_slice %18 {offsets = [0, 1], sizes = [8, 1], strides = [1, 1]} : vector<8x128xf32> to vector<8x1xf32>
    %21 = arith.maximumf %19, %20 : vector<8x1xf32>
    %22 = arith.subf %19, %21 : vector<8x1xf32>
    %23 = math.exp %22 : vector<8x1xf32>
    %24 = arith.subf %20, %21 : vector<8x1xf32>
    %25 = math.exp %24 : vector<8x1xf32>
    %26 = arith.addf %23, %25 : vector<8x1xf32>
    %cst_13 = arith.constant 1.000000e+00 : f32
    %27 = vector.broadcast %cst_13 : f32 to vector<8x1xf32>
    %28 = arith.divf %27, %26 : vector<8x1xf32>
    %29 = arith.mulf %23, %28 : vector<8x1xf32>
    %30 = arith.mulf %25, %28 : vector<8x1xf32>
    %31 = arith.cmpf ogt, %20, %19 : vector<8x1xf32>
    %32 = arith.extui %31 : vector<8x1xi1> to vector<8x1xi32>
    %33 = arith.sitofp %32 : vector<8x1xi32> to vector<8x1xf32>
    %34 = arith.maximumf %29, %30 : vector<8x1xf32>
    %35 = arith.subf %29, %34 : vector<8x1xf32>
    %36 = math.exp %35 : vector<8x1xf32>
    %37 = arith.subf %30, %34 : vector<8x1xf32>
    %38 = math.exp %37 : vector<8x1xf32>
    %39 = arith.addf %36, %38 : vector<8x1xf32>
    %40 = math.log %39 : vector<8x1xf32>
    %41 = arith.addf %40, %34 : vector<8x1xf32>
    %c0_14 = arith.constant 0 : index
    %c0_15 = arith.constant 0 : index
    %42 = vector.load %arg6[%c0_14, %c0_15] : memref<8x1xi32, #tpu.memory_space<vmem>>, vector<8x1xi32>
    %43 = arith.sitofp %42 : vector<8x1xi32> to vector<8x1xf32>
    %44 = arith.subf %30, %41 : vector<8x1xf32>
    %45 = arith.mulf %43, %44 : vector<8x1xf32>
    %cst_16 = arith.constant 1.000000e+00 : f32
    %46 = vector.broadcast %cst_16 : f32 to vector<8x1xf32>
    %47 = arith.subf %46, %43 : vector<8x1xf32>
    %48 = arith.subf %29, %41 : vector<8x1xf32>
    %49 = arith.mulf %47, %48 : vector<8x1xf32>
    %50 = arith.addf %45, %49 : vector<8x1xf32>
    %cst_17 = arith.constant 0.000000e+00 : f32
    %51 = vector.broadcast %cst_17 : f32 to vector<8x1xf32>
    %52 = arith.subf %51, %50 : vector<8x1xf32>
    %53 = tpu.iota {dimensions = array<i32: 1>} : vector<8x128xi32>
    %c0_i32 = arith.constant 0 : i32
    %54 = vector.broadcast %c0_i32 : i32 to vector<8x128xi32>
    %55 = arith.cmpi eq, %53, %54 : vector<8x128xi32>
    %cst_18 = arith.constant 0.000000e+00 : f32
    %56 = vector.shape_cast %29 : vector<8x1xf32> to vector<8x1xf32>
    %57 = vector.broadcast %56 : vector<8x1xf32> to vector<8x128xf32>
    %58 = vector.broadcast %cst_18 : f32 to vector<8x128xf32>
    %59 = arith.select %55, %57, %58 : vector<8x128xi1>, vector<8x128xf32>
    %c1_i32 = arith.constant 1 : i32
    %60 = vector.broadcast %c1_i32 : i32 to vector<8x128xi32>
    %61 = arith.cmpi eq, %53, %60 : vector<8x128xi32>
    %62 = vector.shape_cast %30 : vector<8x1xf32> to vector<8x1xf32>
    %63 = vector.broadcast %62 : vector<8x1xf32> to vector<8x128xf32>
    %64 = arith.select %61, %63, %59 : vector<8x128xi1>, vector<8x128xf32>
    %c2_i32 = arith.constant 2 : i32
    %65 = vector.broadcast %c2_i32 : i32 to vector<8x128xi32>
    %66 = arith.cmpi eq, %53, %65 : vector<8x128xi32>
    %67 = vector.shape_cast %33 : vector<8x1xf32> to vector<8x1xf32>
    %68 = vector.broadcast %67 : vector<8x1xf32> to vector<8x128xf32>
    %69 = arith.select %66, %68, %64 : vector<8x128xi1>, vector<8x128xf32>
    %c3_i32 = arith.constant 3 : i32
    %70 = vector.broadcast %c3_i32 : i32 to vector<8x128xi32>
    %71 = arith.cmpi eq, %53, %70 : vector<8x128xi32>
    %72 = vector.shape_cast %52 : vector<8x1xf32> to vector<8x1xf32>
    %73 = vector.broadcast %72 : vector<8x1xf32> to vector<8x128xf32>
    %74 = arith.select %71, %73, %69 : vector<8x128xi1>, vector<8x128xf32>
    %c0_19 = arith.constant 0 : index
    %c0_20 = arith.constant 0 : index
    %75 = vector.load %arg7[%c0_19, %c0_20] : memref<8x128xf32, #tpu.memory_space<vmem>>, vector<8x128xf32>
    tpu.vector_store %arg7[%c0_19, %c0_20], %74 {strides = array<i32>} : memref<8x128xf32, #tpu.memory_space<vmem>>, vector<8x128xf32>,
    return
  }
  func.func @transform_0(%arg0: i32) -> (i32, i32) {
    %c0_i32 = arith.constant 0 : i32
    %c0_i32_0 = arith.constant 0 : i32
    return %arg0, %c0_i32 : i32, i32
  }
  func.func @transform_1(%arg0: i32) -> (i32, i32) {
    %c0_i32 = arith.constant 0 : i32
    %c0_i32_0 = arith.constant 0 : i32
    %c0_i32_1 = arith.constant 0 : i32
    return %c0_i32, %c0_i32_0 : i32, i32
  }
  func.func @transform_2(%arg0: i32) -> (i32, i32) {
    %c0_i32 = arith.constant 0 : i32
    %c0_i32_0 = arith.constant 0 : i32
    %c0_i32_1 = arith.constant 0 : i32
    return %c0_i32, %c0_i32_0 : i32, i32
  }
  func.func @transform_3(%arg0: i32) -> (i32, i32) {
    %c0_i32 = arith.constant 0 : i32
    %c0_i32_0 = arith.constant 0 : i32
    %c0_i32_1 = arith.constant 0 : i32
    return %c0_i32, %c0_i32_0 : i32, i32
  }
  func.func @transform_4(%arg0: i32) -> (i32, i32) {
    %c0_i32 = arith.constant 0 : i32
    %c0_i32_0 = arith.constant 0 : i32
    %c0_i32_1 = arith.constant 0 : i32
    return %c0_i32, %c0_i32_0 : i32, i32
  }
  func.func @transform_5(%arg0: i32) -> (i32, i32) {
    %c0_i32 = arith.constant 0 : i32
    %c0_i32_0 = arith.constant 0 : i32
    return %arg0, %c0_i32 : i32, i32
  }
  func.func @transform_6(%arg0: i32) -> (i32, i32) {
    %c0_i32 = arith.constant 0 : i32
    %c0_i32_0 = arith.constant 0 : i32
    return %arg0, %c0_i32 : i32, i32
  }
}

</mosaic_0001>

<bundles_post_ra>
// kernel: tpu_custom_call.1
= control target key start
LH: loop header
LB: loop body
LE: loop exit
PB: predicated region body
PF: predicated region fallthrough
CT: control target
= control target key end

     0   :  { %11 = vsyncpa [#allocation3], 0  ;;  %s684_s0 = inlined_call_operand.vmem [shape: bf16[8,128], index: 0, kind: input, shape index: {}]   ;;  %s685_s1 = inlined_call_operand.hbm [shape: bf16[128,128], index: 1, kind: input, shape index: {}]   ;;  %s686_s2 = inlined_call_operand.vmem [shape: f32[1,128], index: 2, kind: input, shape index: {}]   ;;  %s687_s3 = inlined_call_operand.hbm [shape: f32[128,128], index: 3, kind: input, shape index: {}]   ;;  %s688_s4 = inlined_call_operand.vmem [shape: f32[1,128], index: 4, kind: input, shape index: {}]   ;;  %s689_s5 = inlined_call_operand.vmem [shape: s32[8,1], index: 5, kind: input, shape index: {}]   ;;  %s690_s6 = inlined_call_operand.hbm [shape: f32[8,128], index: 6, kind: output, shape index: {}]  }
   0x1   :  { %12 = vsyncpa [#allocation6], 0 }
   0x2   :  { %13 = vsyncpa [#allocation4], 0  ;;  %s578_s21 = smov [#allocation2]  }
   0x3   :  { %s21_s22 = sshll.u32 %s578_s21, 4  ;;  %s22_s22 = int_to_ptr.vmem [resolvable:$true] %s21_s22 }
   0x4   :  { %s520_s23 = scalar_lea.vmem %s22_s22, 1024  ;;  %p525_p1 = scmp.lt.s32.totalorder %s22_s22, %s22_s22 }
   0x5   :  { %p521_p0 = scmp.ne.s32.totalorder %s22_s22, %s520_s23  ;;  %p526_p2 = scmp.lt.s32.totalorder %s520_s23, %s520_s23 }
   0x7   :  { %p527_p3 = por %p526_p2, %p525_p1 }
   0x9   :  { %p528_p4 = pnand %p527_p3, %p521_p0 }
   0xb   :  { %531 = shalt.err (!%p528_p4)
}
   0xc   :  { %s579_s24 = smov 64   ;;  %s580_s25 = smov 4  }
   0xd   :  { %27 = dma.hbm_to_vmem [thread:$0]  %s685_s1, 1024, %s22_s22, [#allocation3], %s579_s24, %s579_s24, %s580_s25  }
   0xe   :  { %s581_s28 = smov [#allocation5]  }
   0xf   :  { %s35_s29 = sshll.u32 %s581_s28, 4  ;;  %s36_s29 = int_to_ptr.vmem [resolvable:$true] %s35_s29 }
  0x10   :  { %s540_s30 = scalar_lea.vmem %s36_s29, 2048  ;;  %p545_p6 = scmp.lt.s32.totalorder %s36_s29, %s36_s29 }
  0x11   :  { %p541_p5 = scmp.ne.s32.totalorder %s36_s29, %s540_s30  ;;  %p546_p7 = scmp.lt.s32.totalorder %s540_s30, %s540_s30 }
  0x13   :  { %p547_p8 = por %p546_p7, %p545_p6 }
  0x15   :  { %p548_p9 = pnand %p547_p8, %p541_p5 }
  0x17   :  { %551 = shalt.err (!%p548_p9)
}
  0x18   :  { %s582_s7 = smov 128   ;;  %s583_s8 = smov 8  }
  0x19   :  { %41 = dma.hbm_to_vmem [thread:$0]  %s687_s3, 2048, %s36_s29, [#allocation6], %s582_s7, %s582_s7, %s583_s8  }
  0x1a   :  { %572 = dma.done.wait [#allocation3], 1024  }
  0x1b   :  { %573 = vsyncadd [#allocation3], 4294966272 }
  0x1c   :  { %574 = dma.done.wait [#allocation6], 2048  }
  0x1d   :  { %575 = vsyncadd [#allocation6], 4294965248  ;;  %v584_v0 = vmov 0.0   ;;  %vm585_vm0 = vmmov 0   ;;  %v490_v1 = vld [vmem:[#allocation2 + $0x38] sm:$0xff]   ;;  %v491_v2 = vld [vmem:[#allocation2 + $0x30] sm:$0xff]  }
  0x1e   :  { %420 = vmatprep.subr.bf16.mxu0 %v584_v0  ;;  %436 = vmatprep.mubr.msk.bf16.mxu0 %vm585_vm0, %v584_v0  ;;  %v492_v3 = vld [vmem:[#allocation2 + $0x28] sm:$0xff]   ;;  %v185_v4 = vld [vmem:[#allocation5 + $0x78] sm:$0xff]  ;;  %v184_v5 = vld [vmem:[#allocation5 + $0x70] sm:$0xff]  ;;  %s587_s14 = smov 1   ;;  %v588_v62 = vmov 1   ;;  %s590_s16 = smov [#allocation7]  }
  0x1f   :  { %440 = vmatprep.subr.mxu1 %v584_v0  ;;  %472 = vmatprep.mubr.msk.f32.mxu1 %vm585_vm0, %v584_v0  ;;  %v493_v6 = vld [vmem:[#allocation2 + $0x20] sm:$0xff]   ;;  %v183_v7 = vld [vmem:[#allocation5 + $0x68] sm:$0xff]  ;;  %v494_v9 = vld [vmem:[#allocation2 + $0x18] sm:$0xff]  }
  0x20   :  { %421 = vmatpush3.bf16.msra.mxu0 %v490_v1  ;;  %441 = vmatpush3.msra.mxu1 %v185_v4  ;;  %v182_v8 = vld [vmem:[#allocation5 + $0x60] sm:$0xff]  ;;  %v495_v10 = vld [vmem:[#allocation2 + $0x10] sm:$0xff]   ;;  %v496_v11 = vld [vmem:[#allocation2 + $0x8] sm:$0xff]  }
  0x21   :  { %422 = vmatprep.subr.bf16.mxu0 %v584_v0  ;;  %442 = vmatprep.subr.mxu1 %v584_v0  ;;  %v497_v12 = vld [vmem:[#allocation2] sm:$0xff]   ;;  %v181_v14 = vld [vmem:[#allocation5 + $0x58] sm:$0xff]  ;;  %v180_v15 = vld [vmem:[#allocation5 + $0x50] sm:$0xff] }
  0x22   :  { %443 = vmatpush3.msra.mxu1 %v184_v5  ;;  %v53_v13 = vld [vmem:[%s684_s0] sm:$0xf]  ;;  %v179_v16 = vld [vmem:[#allocation5 + $0x48] sm:$0xff]  ;;  %v177_v18 = vld [vmem:[#allocation5 + $0x38] sm:$0xff]  ;;  %489 = vset.pattern.permute.xlu1 %v588_v62  ;;  %v589_v5 = vmov 0  }
  0x23   :  { %444 = vmatprep.subr.mxu1 %v584_v0  ;;  %v178_v17 = vld [vmem:[#allocation5 + $0x40] sm:$0xff]  ;;  %v176_v19 = vld [vmem:[#allocation5 + $0x30] sm:$0xff]  ;;  %v175_v20 = vld [vmem:[#allocation5 + $0x28] sm:$0xff]  ;;  %488 = vset.pattern.permute.xlu0 %v589_v5 }
  0x24   :  { %423 = vmatpush3.bf16.msra.mxu0 %v491_v2  ;;  %445 = vmatpush3.msra.mxu1 %v183_v7  ;;  %v174_v21 = vld [vmem:[#allocation5 + $0x20] sm:$0xff]  ;;  %v173_v22 = vld [vmem:[#allocation5 + $0x18] sm:$0xff]  ;;  %v172_v23 = vld [vmem:[#allocation5 + $0x10] sm:$0xff] }
  0x25   :  { %424 = vmatprep.subr.bf16.mxu0 %v584_v0  ;;  %446 = vmatprep.subr.mxu1 %v584_v0  ;;  %v171_v24 = vld [vmem:[#allocation5 + $0x8] sm:$0xff]  ;;  %v170_v25 = vld [vmem:[#allocation5] sm:$0xff] }
  0x26   :  { %447 = vmatpush3.msra.mxu1 %v182_v8  ;;  %v383_v26 = vld [vmem:[%s686_s2] ss:$0 sm:$0xff]  ;;  %s586_s2 = smov 127  }
  0x27   :  { %448 = vmatprep.subr.mxu1 %v584_v0  ;;  %v392_v37 = vld [vmem:[%s688_s4] ss:$0 sm:$0xff] }
  0x28   :  { %425 = vmatpush3.bf16.msra.mxu0 %v492_v3  ;;  %449 = vmatpush3.msra.mxu1 %v181_v14 }
  0x29   :  { %426 = vmatprep.subr.bf16.mxu0 %v584_v0  ;;  %450 = vmatprep.subr.mxu1 %v584_v0 }
  0x2a   :  { %451 = vmatpush3.msra.mxu1 %v180_v15 }
  0x2b   :  { %452 = vmatprep.subr.mxu1 %v584_v0 }
  0x2c   :  { %427 = vmatpush3.bf16.msra.mxu0 %v493_v6  ;;  %453 = vmatpush3.msra.mxu1 %v179_v16 }
  0x2d   :  { %428 = vmatprep.subr.bf16.mxu0 %v584_v0  ;;  %454 = vmatprep.subr.mxu1 %v584_v0 }
  0x2e   :  { %455 = vmatpush3.msra.mxu1 %v178_v17 }
  0x2f   :  { %456 = vmatprep.subr.mxu1 %v584_v0 }
  0x30   :  { %429 = vmatpush3.bf16.msra.mxu0 %v494_v9  ;;  %457 = vmatpush3.msra.mxu1 %v177_v18 }
  0x31   :  { %430 = vmatprep.subr.bf16.mxu0 %v584_v0  ;;  %458 = vmatprep.subr.mxu1 %v584_v0 }
  0x32   :  { %459 = vmatpush3.msra.mxu1 %v176_v19 }
  0x33   :  { %460 = vmatprep.subr.mxu1 %v584_v0 }
  0x34   :  { %431 = vmatpush3.bf16.msra.mxu0 %v495_v10  ;;  %461 = vmatpush3.msra.mxu1 %v175_v20 }
  0x35   :  { %432 = vmatprep.subr.bf16.mxu0 %v584_v0  ;;  %462 = vmatprep.subr.mxu1 %v584_v0 }
  0x36   :  { %463 = vmatpush3.msra.mxu1 %v174_v21 }
  0x37   :  { %464 = vmatprep.subr.mxu1 %v584_v0 }
  0x38   :  { %433 = vmatpush3.bf16.msra.mxu0 %v496_v11  ;;  %465 = vmatpush3.msra.mxu1 %v173_v22  ;;  %v337_v22 = vlaneseq }
  0x39   :  { %434 = vmatprep.subr.bf16.mxu0 %v584_v0  ;;  %466 = vmatprep.subr.mxu1 %v584_v0 }
  0x3a   :  { %467 = vmatpush3.msra.mxu1 %v172_v23  ;;  %v338_v23 = vand.u32 127, %v337_v22 }
  0x3b   :  { %468 = vmatprep.subr.mxu1 %v584_v0 }
  0x3c   :  { %435 = vmatpush3.bf16.msra.mxu0 %v497_v12  ;;  %469 = vmatpush3.msra.mxu1 %v171_v24  ;;  %vm339_vm2 = vcmp.eq.s32.totalorder %v338_v23, 0  ;;  %vm346_vm3 = vcmp.eq.s32.totalorder %v338_v23, 1  ;;  %vm352_vm4 = vcmp.eq.s32.totalorder %v338_v23, 2  ;;  %vm359_vm5 = vcmp.eq.s32.totalorder %v338_v23, 3 }
  0x3d   :  { %470 = vmatprep.subr.mxu1 %v584_v0 }
  0x3e   :  { %471 = vmatpush3.msra.mxu1 %v170_v25 }
  0x3f   :  { %437 = vmatmul.mubr.bf16.vlgmr.msra.gmra.mxu0 %v53_v13  ;;  %v320_v13 = vld [vmem:[%s689_s5] sm:$0xff]  ;;  %s373_s5 = sshll.u32 %s590_s16, 4  ;;  %s374_s5 = int_to_ptr.vmem [resolvable:$true] %s373_s5 }
  0x40   :  { %v321_v14 = vcvt.s32.f32 %v320_v13  ;;  %s552_s17 = scalar_lea.vmem %s374_s5, 128  ;;  %p557_p11 = scmp.lt.s32.totalorder %s374_s5, %s374_s5 }
  0x41   :  { %p553_p10 = scmp.ne.s32.totalorder %s374_s5, %s552_s17  ;;  %p558_p12 = scmp.lt.s32.totalorder %s552_s17, %s552_s17 }
  0x42   :  { %v332_v16 = vsub.f32 1.0, %v321_v14 }
  0x43   :  { %p559_p13 = por %p558_p12, %p557_p11 }
  0x45   :  { %p560_p0 = pnand %p559_p13, %p553_p10 }
  0xff   :  { %v159_v27 = vpop.f32.mrf.mxu0 }
 0x100   :  { %v160_v28 = vadd.f32 %v383_v26, %v159_v27 }
 0x101   :  { %v438_v29 = vpop.f32.mrf.mxu0 }
 0x102   :  { %v166_v30 = vmul.f32 0.70710677, %v160_v28  ;;  %v165_v34 = vmul.f32 0.5, %v160_v28 }
 0x103   :  { %v162_v31 = vpop.f32.mrf.mxu0 }
 0x104   :  { %498 = verf.f32 %v166_v30 }
 0x105   :  { %v439_v32 = vpop.f32.mrf.mxu0 }
 0x111   :  { %v499_v33 = vpop.eup %498 }
 0x112   :  { %v168_v35 = vadd.f32 1.0, %v499_v33 }
 0x114   :  { %v169_v36 = vmul.f32 %v168_v35, %v165_v34 }
 0x116   :  { %473 = vmatmul.mubr.f32.vlgmr.msra.gmra.mxu1 %v169_v36 }
 0x1d6   :  { %v259_v38 = vpop.f32.mrf.mxu1 }
 0x1d7   :  { %v260_v39 = vadd.f32 %v392_v37, %v259_v38 }
 0x1d8   :  { %v474_v40 = vpop.f32.mrf.mxu1 }
 0x1d9   :  { %264 = vrot.lane.b32.xlu0 %v260_v39, %s586_s2 }
 0x24b   :  { %v265_v41 = vpop.permute.xlu0 %264 }
 0x24c   :  { %v267_v42 = vmax.f32 %v260_v39, %v265_v41 }
 0x24e   :  { %272 = vrot.lane.b32.xlu0 %v267_v42, %s587_s14  ;;  %v268_v47 = vsub.f32 %v260_v39, %v267_v42 }
 0x250   :  { %v269_v48 = vmul.f32 1.442695, %v268_v47 }
 0x2c0   :  { %v273_v43 = vpop.permute.xlu0 %272 }
 0x2c1   :  { %v275_v44 = vsub.f32 %v260_v39, %v273_v43 }
 0x2c3   :  { %v276_v45 = vmul.f32 1.442695, %v275_v44 }
 0x2c5   :  { %500 = vpow2.f32 %v276_v45 }
 0x2c6   :  { %502 = vpow2.f32 %v269_v48 }
 0x2d2   :  { %v501_v46 = vpop.eup %500 }
 0x2d3   :  { %279 = vrot.lane.b32.xlu1 %v501_v46, %s586_s2  ;;  %v503_v49 = vpop.eup %502 }
 0x345   :  { %v280_v50 = vpop.permute.xlu1 %279 }
 0x346   :  { %v282_v51 = vadd.f32 %v503_v49, %v280_v50 }
 0x348   :  { %504 = vrcp.f32 %v282_v51 }
 0x355   :  { %v505_v52 = vpop.eup %504 }
 0x356   :  { %287 = vrot.lane.b32.xlu1 %v505_v52, %s587_s14  ;;  %v285_v53 = vmul.f32 %v505_v52, %v503_v49 }
 0x3c8   :  { %v288_v54 = vpop.permute.xlu1 %287 }
 0x3c9   :  { %v290_v55 = vmul.f32 %v501_v46, %v288_v54 }
 0x3cb   :  { %298 = vrot.lane.b32.xlu0 %v290_v55, %s586_s2 }
 0x43d   :  { %v299_v56 = vpop.permute.xlu0 %298 }
 0x43e   :  { %v301_v57 = vmax.f32 %v285_v53, %v299_v56 }
 0x440   :  { %306 = vrot.lane.b32.xlu1 %v301_v57, %s587_s14  ;;  %v302_v63 = vsub.f32 %v285_v53, %v301_v57 }
 0x442   :  { %v303_v1 = vmul.f32 1.442695, %v302_v63 }
 0x4b2   :  { %v307_v58 = vpop.permute.xlu1 %306 }
 0x4b3   :  { %v309_v59 = vsub.f32 %v290_v55, %v307_v58 }
 0x4b5   :  { %v310_v60 = vmul.f32 1.442695, %v309_v59 }
 0x4b7   :  { %506 = vpow2.f32 %v310_v60 }
 0x4b8   :  { %508 = vpow2.f32 %v303_v1 }
 0x4c4   :  { %v507_v61 = vpop.eup %506 }
 0x4c5   :  { %313 = vrot.lane.b32.xlu0 %v507_v61, %s586_s2  ;;  %v509_v2 = vpop.eup %508 }
 0x537   :  { %v314_v3 = vpop.permute.xlu0 %313 }
 0x538   :  { %v316_v4 = vadd.f32 %v509_v2, %v314_v3 }
 0x53a   :  { %510 = vlog2.f32 %v316_v4 }
 0x547   :  { %v511_v6 = vpop.eup %510 }
 0x548   :  { %v318_v7 = vmul.f32 0.6931472, %v511_v6 }
 0x54a   :  { %v319_v8 = vadd.f32 %v318_v7, %v301_v57 }
 0x54c   :  { %323 = vrot.lane.b32.xlu1 %v319_v8, %s587_s14  ;;  %v333_v15 = vsub.f32 %v285_v53, %v319_v8 }
 0x54e   :  { %v334_v19 = vmul.f32 %v333_v15, %v332_v16 }
 0x550   :  { %291 = vrot.lane.b32.xlu1 %v260_v39, %s587_s14 }
 0x554   :  { %348 = vperm.xlu1 %489, %v290_v55  }
 0x5be   :  { %v324_v9 = vpop.permute.xlu1 %323 }
 0x5bf   :  { %v326_v10 = vsub.f32 %v290_v55, %v324_v9 }
 0x5c1   :  { %328 = vrot.lane.b32.xlu0 %v326_v10, %s586_s2 }
 0x5c2   :  { %v292_v11 = vpop.permute.xlu1 %291 }
 0x5c3   :  { %vm294_vm1 = vcmp.gt.f32.partialorder %v260_v39, %v292_v11 }
 0x5c4   :  { %v393_v12 = vsel %vm294_vm1, 1.0, %v584_v0 }
 0x5c5   :  { %342 = vperm.xlu0 %488, %v285_v53   ;;  %355 = vperm.xlu1 %489, %v393_v12  }
 0x5cf   :  { %v349_v25 = vpop.permute.xlu1 %348 }
 0x633   :  { %v329_v17 = vpop.permute.xlu0 %328 }
 0x634   :  { %v331_v18 = vmul.f32 %v329_v17, %v321_v14 }
 0x636   :  { %v335_v20 = vadd.f32 %v334_v19, %v331_v18 }
 0x638   :  { %v336_v21 = vsub.f32 0.0, %v335_v20 }
 0x63a   :  { %362 = vperm.xlu0 %488, %v336_v21  }
 0x640   :  { %v343_v24 = vpop.permute.xlu0 %342  ;;  %v356_v27 = vpop.permute.xlu1 %355 }
 0x641   :  { %v345_v0 = vsel %vm339_vm2, %v343_v24, 0.0 }
 0x642   :  { %v351_v26 = vsel %vm346_vm3, %v349_v25, %v345_v0 }
 0x643   :  { %v358_v28 = vsel %vm352_vm4, %v356_v27, %v351_v26 }
 0x6b5   :  { %v363_v29 = vpop.permute.xlu0 %362 }
 0x6b6   :  { %v365_v30 = vsel %vm359_vm5, %v363_v29, %v358_v28 }
 0x6b7   :  { %366 = vst [vmem:[#allocation7] sm:$0xff] %v365_v30 }
 0x6b8   :  { %563 = shalt.err (!%p560_p0)
}
 0x6b9   :  { %376 = dma.vmem_to_hbm [thread:$0]  %s374_s5, 128, %s690_s6, [#allocation4]  }
 0x6ba   :  { %576 = dma.done.wait [#allocation4], 128  }
 0x6bb   :  { %577 = vsyncadd [#allocation4], 4294967168 }
 0x6bc   :  { %380 = vsyncpa [#allocation3], 1 }
 0x6bd   :  { %381 = vsyncpa [#allocation6], 1 }
 0x6be   :  { %382 = vsyncpa [#allocation4], 1 }

</bundles_post_ra>
